<compile_context>
chip_gen: v7x
topology: tpu7x:2x2x1
jax: 0.10.0
libtpu: 0.0.40
codegen_flags: <defaults>
</compile_context>

<pallas_src>
import math

import jax
import jax.numpy as jnp
from jax.experimental import pallas as pl
from jax.experimental.pallas import tpu as pltpu

# EPSILON is defined elsewhere in the original repo; use a small constant.
EPSILON = 1e-8
_LOG_EPS = math.log(EPSILON)

_TB_ALIGN = 16   # batch-tile alignment (bf16 sublane packing = 16 rows)


def _round_up(x, m):
    return (x + m - 1) // m * m


# ---------------------------------------------------------------------------
# Kernel
# ---------------------------------------------------------------------------

def _actor_kernel(x_ref, w1_ref, b1_ref, w2_ref, b2_ref, w3_ref, b3_ref,
                  sigma_ref, noise_ref, out_ref):
    # 3-layer tanh MLP.  Matmul operands are bf16 (MXU-native on v5e/v6e/v7x),
    # accumulation in f32; tanh/exp kept in f32 (v5e has no bf16 VPU/EUP).
    h1 = jnp.tanh(
        jnp.dot(x_ref[...], w1_ref[...], preferred_element_type=jnp.float32)
        + b1_ref[...])
    h2 = jnp.tanh(
        jnp.dot(h1.astype(jnp.bfloat16), w2_ref[...],
                preferred_element_type=jnp.float32) + b2_ref[...])
    loc = jnp.tanh(
        jnp.dot(h2.astype(jnp.bfloat16), w3_ref[...],
                preferred_element_type=jnp.float32) + b3_ref[...])

    # scale = exp(clip(sigma, min=log(EPSILON))) — one tiny (1, out) EUP exp.
    scale = jnp.exp(jnp.maximum(sigma_ref[...], _LOG_EPS))

    # Reparameterized Normal sample; narrow (tb, out_size) store.
    out_ref[...] = loc + scale * noise_ref[...]


# ---------------------------------------------------------------------------
# Wrapper
# ---------------------------------------------------------------------------

def prepare_actor_params(params):
    """One-time (per parameter-update) prep, hoisted off the per-step hot path:
    weights -> bf16 MXU operands, biases/sigma -> f32 row vectors."""
    w1, b1, w2, b2, w3, b3, sigma = params
    bf16, f32 = jnp.bfloat16, jnp.float32
    return (w1.astype(bf16), b1.astype(f32).reshape(1, -1),
            w2.astype(bf16), b2.astype(f32).reshape(1, -1),
            w3.astype(bf16), b3.astype(f32).reshape(1, -1),
            sigma.astype(f32).reshape(1, -1))


def actor_forward(state, prepared_params, noise=None, *, key=None,
                  block_b=2048):
    """Sample Normal(MLP(state), exp(clip(sigma, log(EPS)))) in one Pallas call.

    state           : (B, input_size) array
    prepared_params : output of prepare_actor_params()
    noise           : optional (B, output_size) pre-drawn N(0,1) noise
    key             : jax PRNG key used to draw noise if `noise` is None
    block_b         : batch-tile rows (default 2048), clamped for small B
    """
    w1, b1, w2, b2, w3, b3, sigma = prepared_params
    B, in_size = state.shape
    H = w1.shape[1]
    out_size = w3.shape[1]

    if noise is None:
        if key is None:
            raise ValueError("pass either `noise` or a PRNG `key`")
        noise = jax.random.normal(key, (B, out_size), jnp.float32)
    # TODO(synk): on real TPU the noise draw could be fused in-kernel via
    # pltpu.prng_seed + pltpu.stateful_normal, but those primitives have no
    # CPU/interpret lowering, so N(0,1) is drawn with jax.random here.

    # ---- batch tiling ------------------------------------------------------
    tb = _round_up(min(block_b, _round_up(B, _TB_ALIGN)), _TB_ALIGN)
    b_pad = _round_up(B, tb)
    num_tiles = b_pad // tb

    x = state.astype(jnp.bfloat16)
    eps = noise.astype(jnp.float32)
    if b_pad != B:                       # only pad when the batch is ragged
        x = jnp.pad(x, ((0, b_pad - B), (0, 0)))
        eps = jnp.pad(eps, ((0, b_pad - B), (0, 0)))

    def resident(a):                     # stays in VMEM across all grid steps
        return pl.BlockSpec(a.shape, lambda i: (0,) * a.ndim)

    def batched(width):                  # tiled along the batch axis
        return pl.BlockSpec((tb, width), lambda i: (i, 0))

    inputs = [x, w1, b1, w2, b2, w3, b3, sigma, eps]
    in_specs = ([batched(in_size)]
                + [resident(a) for a in inputs[1:-1]]
                + [batched(out_size)])

    flops = 2 * b_pad * (in_size * H + H * H + H * out_size)
    transcendentals = b_pad * (2 * H + out_size) + out_size
    bytes_accessed = (sum(int(a.size) * a.dtype.itemsize for a in inputs)
                      + b_pad * out_size * 4)

    out = pl.pallas_call(
        _actor_kernel,
        out_shape=jax.ShapeDtypeStruct((b_pad, out_size), jnp.float32),
        grid_spec=pltpu.PrefetchScalarGridSpec(
            num_scalar_prefetch=0,
            grid=(num_tiles,),
            in_specs=in_specs,
            out_specs=pl.BlockSpec((tb, out_size), lambda i: (i, 0)),
        ),
        compiler_params=pltpu.CompilerParams(
            # Batch tiles are independent -> megacore-shard them on v7x.
            dimension_semantics=("parallel",)),
        cost_estimate=pl.CostEstimate(flops=flops,
                                      transcendentals=transcendentals,
                                      bytes_accessed=bytes_accessed),
    )(*inputs)

    return out if b_pad == B else out[:B]


# ---------------------------------------------------------------------------
# Params + pure-JAX references
# ---------------------------------------------------------------------------

def init_actor_params(key, input_size, output_size, hidden_size=128):
    """torch.nn.Linear default init: U(-1/sqrt(fan_in), 1/sqrt(fan_in)).
    Weights stored (fan_in, fan_out); biases (1, fan_out); sigma zeros (1, out)."""
    ks = jax.random.split(key, 6)

    def linear(kw, kb, fan_in, fan_out):
        bound = 1.0 / math.sqrt(fan_in)
        w = jax.random.uniform(kw, (fan_in, fan_out), jnp.float32, -bound, bound)
        b = jax.random.uniform(kb, (1, fan_out), jnp.float32, -bound, bound)
        return w, b

    w1, b1 = linear(ks[0], ks[1], input_size, hidden_size)
    w2, b2 = linear(ks[2], ks[3], hidden_size, hidden_size)
    w3, b3 = linear(ks[4], ks[5], hidden_size, output_size)
    sigma = jnp.zeros((1, output_size), jnp.float32)   # nn.Parameter(zeros(out))
    return (w1, b1, w2, b2, w3, b3, sigma)


def actor_loc_ref(state, params):
    w1, b1, w2, b2, w3, b3, _ = params
    h1 = jnp.tanh(state @ w1 + b1)
    h2 = jnp.tanh(h1 @ w2 + b2)
    return jnp.tanh(h2 @ w3 + b3)


def actor_forward_ref(state, params, noise):
    scale = jnp.exp(jnp.maximum(params[-1], _LOG_EPS))
    return actor_loc_ref(state, params) + scale * noise


if __name__ == "__main__":
    INPUT_SIZE = 16
    OUTPUT_SIZE = 8
    HIDDEN_SIZE = 128

    key = jax.random.PRNGKey(0)
    k_param, k_state, k_noise, k_state2, k_noise2 = jax.random.split(key, 5)

    params = init_actor_params(k_param, INPUT_SIZE, OUTPUT_SIZE, HIDDEN_SIZE)
    prepared = prepare_actor_params(params)

    # 1) Single-tile batch, explicit noise -> compare against the f32 reference
    #    (tolerance accounts for bf16 MXU operands).
    B = 8
    state = jax.random.normal(k_state, (B, INPUT_SIZE), jnp.float32)
    noise = jax.random.normal(k_noise, (B, OUTPUT_SIZE), jnp.float32)
    out = jax.block_until_ready(actor_forward(state, prepared, noise=noise))
    ref = actor_forward_ref(state, params, noise)
    assert out.shape == (B, OUTPUT_SIZE)
    assert jnp.allclose(out, ref, atol=2e-2, rtol=2e-2), (
        f"mismatch vs reference, max abs err={float(jnp.max(jnp.abs(out - ref)))}")

    # 2) Ragged multi-tile batch -> exercises padding + the "parallel" grid.
    B2 = 20
    state2 = jax.random.normal(k_state2, (B2, INPUT_SIZE), jnp.float32)
    noise2 = jax.random.normal(k_noise2, (B2, OUTPUT_SIZE), jnp.float32)
    out2 = jax.block_until_ready(
        actor_forward(state2, prepared, noise=noise2, block_b=16))
    ref2 = actor_forward_ref(state2, params, noise2)
    assert out2.shape == (B2, OUTPUT_SIZE)
    assert jnp.allclose(out2, ref2, atol=2e-2, rtol=2e-2), "multi-tile mismatch"

    # 3) Production path: noise drawn from a JAX key inside the wrapper.
    out3 = jax.block_until_ready(
        actor_forward(state, prepared, key=jax.random.PRNGKey(1234)))
    assert out3.shape == (B, OUTPUT_SIZE)
    assert bool(jnp.all(jnp.isfinite(out3)))

    print("KERNEL_OK")
</pallas_src>

<mosaic_0001>
module attributes {stable_mosaic.version = 11 : i64} {
  func.func @_actor_kernel(%arg0: i32, %arg1: memref<16x16xbf16, #tpu.memory_space<vmem>>, %arg2: memref<16x128xbf16, #tpu.memory_space<vmem>>, %arg3: memref<1x128xf32, #tpu.memory_space<vmem>>, %arg4: memref<128x128xbf16, #tpu.memory_space<vmem>>, %arg5: memref<1x128xf32, #tpu.memory_space<vmem>>, %arg6: memref<128x8xbf16, #tpu.memory_space<vmem>>, %arg7: memref<1x8xf32, #tpu.memory_space<vmem>>, %arg8: memref<1x8xf32, #tpu.memory_space<vmem>>, %arg9: memref<16x8xf32, #tpu.memory_space<vmem>>, %arg10: memref<16x8xf32, #tpu.memory_space<vmem>>) attributes {dimension_semantics = [#tpu.dimension_semantics<parallel>], iteration_bounds = array<i64: 1>, scalar_prefetch = 0 : i64, scratch_operands = 0 : i64, tpu.core_type = #tpu.core_type<tc>, window_params = [{transform_indices = @transform_0, window_bounds = array<i64: 16, 16>}, {pipeline_mode = #tpu.pipeline_mode<synchronous>, transform_indices = @transform_1, window_bounds = array<i64: 16, 128>}, {pipeline_mode = #tpu.pipeline_mode<synchronous>, transform_indices = @transform_2, window_bounds = array<i64: 1, 128>}, {pipeline_mode = #tpu.pipeline_mode<synchronous>, transform_indices = @transform_3, window_bounds = array<i64: 128, 128>}, {pipeline_mode = #tpu.pipeline_mode<synchronous>, transform_indices = @transform_4, window_bounds = array<i64: 1, 128>}, {pipeline_mode = #tpu.pipeline_mode<synchronous>, transform_indices = @transform_5, window_bounds = array<i64: 128, 8>}, {pipeline_mode = #tpu.pipeline_mode<synchronous>, transform_indices = @transform_6, window_bounds = array<i64: 1, 8>}, {pipeline_mode = #tpu.pipeline_mode<synchronous>, transform_indices = @transform_7, window_bounds = array<i64: 1, 8>}, {transform_indices = @transform_8, window_bounds = array<i64: 16, 8>}, {transform_indices = @transform_9, window_bounds = array<i64: 16, 8>}]} {
    %c0 = arith.constant 0 : index
    %c0_0 = arith.constant 0 : index
    %0 = vector.load %arg1[%c0, %c0_0] : memref<16x16xbf16, #tpu.memory_space<vmem>>, vector<16x16xbf16>
    %c0_1 = arith.constant 0 : index
    %c0_2 = arith.constant 0 : index
    %1 = vector.load %arg2[%c0_1, %c0_2] : memref<16x128xbf16, #tpu.memory_space<vmem>>, vector<16x128xbf16>
    %cst = arith.constant dense<0.000000e+00> : vector<16x128xf32>
    %2 = tpu.matmul %0, %1, %cst {dimension_numbers = #tpu.dot_dimension_numbers<[1], [0], [0], [1], [0, 0, 1, 1], [], []>} : vector<16x16xbf16>, vector<16x128xbf16>, vector<16x128xf32> -> vector<16x128xf32>
    %c0_3 = arith.constant 0 : index
    %c0_4 = arith.constant 0 : index
    %3 = vector.load %arg3[%c0_3, %c0_4] : memref<1x128xf32, #tpu.memory_space<vmem>>, vector<1x128xf32>
    %4 = vector.broadcast %3 : vector<1x128xf32> to vector<16x128xf32>
    %5 = arith.addf %2, %4 : vector<16x128xf32>
    %6 = math.tanh %5 : vector<16x128xf32>
    %7 = arith.truncf %6 : vector<16x128xf32> to vector<16x128xbf16>
    %c0_5 = arith.constant 0 : index
    %c0_6 = arith.constant 0 : index
    %8 = vector.load %arg4[%c0_5, %c0_6] : memref<128x128xbf16, #tpu.memory_space<vmem>>, vector<128x128xbf16>
    %cst_7 = arith.constant dense<0.000000e+00> : vector<16x128xf32>
    %9 = tpu.matmul %7, %8, %cst_7 {dimension_numbers = #tpu.dot_dimension_numbers<[1], [0], [0], [1], [0, 0, 1, 1], [], []>} : vector<16x128xbf16>, vector<128x128xbf16>, vector<16x128xf32> -> vector<16x128xf32>
    %c0_8 = arith.constant 0 : index
    %c0_9 = arith.constant 0 : index
    %10 = vector.load %arg5[%c0_8, %c0_9] : memref<1x128xf32, #tpu.memory_space<vmem>>, vector<1x128xf32>
    %11 = vector.broadcast %10 : vector<1x128xf32> to vector<16x128xf32>
    %12 = arith.addf %9, %11 : vector<16x128xf32>
    %13 = math.tanh %12 : vector<16x128xf32>
    %14 = arith.truncf %13 : vector<16x128xf32> to vector<16x128xbf16>
    %c0_10 = arith.constant 0 : index
    %c0_11 = arith.constant 0 : index
    %15 = vector.load %arg6[%c0_10, %c0_11] : memref<128x8xbf16, #tpu.memory_space<vmem>>, vector<128x8xbf16>
    %cst_12 = arith.constant dense<0.000000e+00> : vector<16x8xf32>
    %16 = tpu.matmul %14, %15, %cst_12 {dimension_numbers = #tpu.dot_dimension_numbers<[1], [0], [0], [1], [0, 0, 1, 1], [], []>} : vector<16x128xbf16>, vector<128x8xbf16>, vector<16x8xf32> -> vector<16x8xf32>
    %c0_13 = arith.constant 0 : index
    %c0_14 = arith.constant 0 : index
    %17 = vector.load %arg7[%c0_13, %c0_14] : memref<1x8xf32, #tpu.memory_space<vmem>>, vector<1x8xf32>
    %18 = vector.broadcast %17 : vector<1x8xf32> to vector<16x8xf32>
    %19 = arith.addf %16, %18 : vector<16x8xf32>
    %20 = math.tanh %19 : vector<16x8xf32>
    %c0_15 = arith.constant 0 : index
    %c0_16 = arith.constant 0 : index
    %21 = vector.load %arg8[%c0_15, %c0_16] : memref<1x8xf32, #tpu.memory_space<vmem>>, vector<1x8xf32>
    %cst_17 = arith.constant -18.420681 : f32
    %22 = vector.broadcast %cst_17 : f32 to vector<1x8xf32>
    %23 = arith.maximumf %21, %22 : vector<1x8xf32>
    %24 = math.exp %23 : vector<1x8xf32>
    %c0_18 = arith.constant 0 : index
    %c0_19 = arith.constant 0 : index
    %25 = vector.load %arg9[%c0_18, %c0_19] : memref<16x8xf32, #tpu.memory_space<vmem>>, vector<16x8xf32>
    %26 = vector.broadcast %24 : vector<1x8xf32> to vector<16x8xf32>
    %27 = arith.mulf %26, %25 : vector<16x8xf32>
    %28 = arith.addf %20, %27 : vector<16x8xf32>
    %c0_20 = arith.constant 0 : index
    %c0_21 = arith.constant 0 : index
    %29 = vector.load %arg10[%c0_20, %c0_21] : memref<16x8xf32, #tpu.memory_space<vmem>>, vector<16x8xf32>
    tpu.vector_store %arg10[%c0_20, %c0_21], %28 {strides = array<i32>} : memref<16x8xf32, #tpu.memory_space<vmem>>, vector<16x8xf32>,
    return
  }
  func.func @transform_0(%arg0: i32) -> (i32, i32) {
    %c0_i32 = arith.constant 0 : i32
    %c0_i32_0 = arith.constant 0 : i32
    return %arg0, %c0_i32 : i32, i32
  }
  func.func @transform_1(%arg0: i32) -> (i32, i32) {
    %c0_i32 = arith.constant 0 : i32
    %c0_i32_0 = arith.constant 0 : i32
    %c0_i32_1 = arith.constant 0 : i32
    return %c0_i32, %c0_i32_0 : i32, i32
  }
  func.func @transform_2(%arg0: i32) -> (i32, i32) {
    %c0_i32 = arith.constant 0 : i32
    %c0_i32_0 = arith.constant 0 : i32
    %c0_i32_1 = arith.constant 0 : i32
    return %c0_i32, %c0_i32_0 : i32, i32
  }
  func.func @transform_3(%arg0: i32) -> (i32, i32) {
    %c0_i32 = arith.constant 0 : i32
    %c0_i32_0 = arith.constant 0 : i32
    %c0_i32_1 = arith.constant 0 : i32
    return %c0_i32, %c0_i32_0 : i32, i32
  }
  func.func @transform_4(%arg0: i32) -> (i32, i32) {
    %c0_i32 = arith.constant 0 : i32
    %c0_i32_0 = arith.constant 0 : i32
    %c0_i32_1 = arith.constant 0 : i32
    return %c0_i32, %c0_i32_0 : i32, i32
  }
  func.func @transform_5(%arg0: i32) -> (i32, i32) {
    %c0_i32 = arith.constant 0 : i32
    %c0_i32_0 = arith.constant 0 : i32
    %c0_i32_1 = arith.constant 0 : i32
    return %c0_i32, %c0_i32_0 : i32, i32
  }
  func.func @transform_6(%arg0: i32) -> (i32, i32) {
    %c0_i32 = arith.constant 0 : i32
    %c0_i32_0 = arith.constant 0 : i32
    %c0_i32_1 = arith.constant 0 : i32
    return %c0_i32, %c0_i32_0 : i32, i32
  }
  func.func @transform_7(%arg0: i32) -> (i32, i32) {
    %c0_i32 = arith.constant 0 : i32
    %c0_i32_0 = arith.constant 0 : i32
    %c0_i32_1 = arith.constant 0 : i32
    return %c0_i32, %c0_i32_0 : i32, i32
  }
  func.func @transform_8(%arg0: i32) -> (i32, i32) {
    %c0_i32 = arith.constant 0 : i32
    %c0_i32_0 = arith.constant 0 : i32
    return %arg0, %c0_i32 : i32, i32
  }
  func.func @transform_9(%arg0: i32) -> (i32, i32) {
    %c0_i32 = arith.constant 0 : i32
    %c0_i32_0 = arith.constant 0 : i32
    return %arg0, %c0_i32 : i32, i32
  }
}

</mosaic_0001>

<bundles_post_ra>
// kernel: tpu_custom_call.1
= control target key start
LH: loop header
LB: loop body
LE: loop exit
PB: predicated region body
PF: predicated region fallthrough
CT: control target
= control target key end

     0   :  { %v477_v0 = vmov 0.0   ;;  %vm478_vm0 = vmmov 0   ;;  %vm55_vm1 = vcmask 130048   ;;  %v339_v42 = vlaneseq  ;;  %s627_s1 = inlined_call_operand.vmem [shape: bf16[16,128], index: 1, kind: input, shape index: {}]   ;;  %s628_s0 = inlined_call_operand.vmem [shape: bf16[16,16], index: 0, kind: input, shape index: {}]   ;;  %s629_s3 = inlined_call_operand.vmem [shape: bf16[128,128], index: 3, kind: input, shape index: {}]   ;;  %s630_s5 = inlined_call_operand.vmem [shape: bf16[128,8], index: 5, kind: input, shape index: {}]   ;;  %s631_s2 = inlined_call_operand.vmem [shape: f32[1,128], index: 2, kind: input, shape index: {}]   ;;  %s632_s4 = inlined_call_operand.vmem [shape: f32[1,128], index: 4, kind: input, shape index: {}]   ;;  %s633_s7 = inlined_call_operand.vmem [shape: f32[1,8], index: 7, kind: input, shape index: {}]   ;;  %s634_s6 = inlined_call_operand.vmem [shape: f32[1,8], index: 6, kind: input, shape index: {}]   ;;  %s635_s8 = inlined_call_operand.vmem [shape: f32[16,8], index: 8, kind: input, shape index: {}]   ;;  %s636_s9 = inlined_call_operand.vmem [shape: f32[16,8], index: 9, kind: output, shape index: {}]  }
   0x1   :  { %397 = vmatprep.subr.bf16.mxu0 %v477_v0  ;;  %v445_v1 = vld [vmem:[%s627_s1] sm:$0xff]   ;;  %399 = vmatprep.mubr.msk.bf16.mxu0 %vm478_vm0, %v477_v0  ;;  %v448_v4 = vld [vmem:[%s629_s3 + $0x8] sm:$0xff]   ;;  %v449_v5 = vld [vmem:[%s629_s3 + $0x10] sm:$0xff]   ;;  %vm348_vm2 = vcmask 64512  }
   0x2   :  { %v446_v2 = vld [vmem:[%s628_s0] sm:$0xff]   ;;  %403 = vmatprep.subr.bf16.mxu1 %v477_v0  ;;  %419 = vmatprep.mubr.msk.bf16.mxu1 %vm478_vm0, %v477_v0  ;;  %v450_v6 = vld [vmem:[%s629_s3 + $0x18] sm:$0xff]   ;;  %v452_v8 = vld [vmem:[%s629_s3 + $0x28] sm:$0xff]   ;;  %v340_v44 = vshrl.u32 %v339_v42, 7 }
   0x3   :  { %398 = vmatpush3.bf16.msra.mxu0 %v445_v1  ;;  %v447_v3 = vld [vmem:[%s629_s3] sm:$0xff]   ;;  %v453_v9 = vld [vmem:[%s629_s3 + $0x30] sm:$0xff]   ;;  %v454_v10 = vld [vmem:[%s629_s3 + $0x38] sm:$0xff]  }
   0x4   :  { %423 = vmatprep.subr.bf16.mxu0 %v477_v0  ;;  %404 = vmatpush3.bf16.msra.mxu1 %v447_v3  ;;  %v451_v7 = vld [vmem:[%s629_s3 + $0x20] sm:$0xff]   ;;  %v456_v12 = vld [vmem:[%s630_s5 + $0x8] sm:$0xff]   ;;  %v457_v13 = vld [vmem:[%s630_s5 + $0x10] sm:$0xff]   ;;  %v341_v48 = vsub.s32 0, %v340_v44 }
   0x5   :  { %405 = vmatprep.subr.bf16.mxu1 %v477_v0  ;;  %v455_v11 = vld [vmem:[%s630_s5] sm:$0xff]   ;;  %v458_v14 = vld [vmem:[%s630_s5 + $0x18] sm:$0xff]   ;;  %v460_v26 = vld [vmem:[%s630_s5 + $0x28] sm:$0xff]  }
   0x6   :  { %400 = vmatmul.mubr.msk.bf16.vlgmr.msra.gmra.mrb[0].mxu0 %vm55_vm1, %v446_v2  ;;  %v355_v15 = vld [vmem:[%s631_s2] ss:$0 sm:$0xff]  ;;  %v461_v27 = vld [vmem:[%s630_s5 + $0x30] sm:$0xff]   ;;  %v462_v28 = vld [vmem:[%s630_s5 + $0x38] sm:$0xff]  }
   0x7   :  { %439 = vmatprep.mubr.msk.bf16.mxu0 %vm478_vm0, %v477_v0  ;;  %424 = vmatpush3.bf16.msra.mxu0 %v455_v11  ;;  %v459_v25 = vld [vmem:[%s630_s5 + $0x20] sm:$0xff]   ;;  %v337_v55 = vld [vmem:[%s635_s8 + $0x8] sm:$0xff] }
   0x8   :  { %406 = vmatpush3.bf16.msra.mxu1 %v448_v4  ;;  %425 = vmatprep.subr.bf16.mxu0 %v477_v0  ;;  %v359_v29 = vld [vmem:[%s632_s4] ss:$0 sm:$0xff] }
   0x9   :  { %407 = vmatprep.subr.bf16.mxu1 %v477_v0  ;;  %v332_v39 = vld [vmem:[%s633_s7] sm:$0x1] }
   0xa   :  { %v333_v40 = vmax.f32 %v332_v39, -18.420681  ;;  %v368_v43 = vld [vmem:[%s634_s6] ss:$0 sm:$0xff] }
   0xb   :  { %426 = vmatpush3.bf16.msra.mxu0 %v456_v12  ;;  %v336_v54 = vld [vmem:[%s635_s8] sm:$0xff] }
   0xc   :  { %408 = vmatpush3.bf16.msra.mxu1 %v449_v5  ;;  %427 = vmatprep.subr.bf16.mxu0 %v477_v0  ;;  %v334_v41 = vmul.f32 1.442695, %v333_v40 }
   0xd   :  { %409 = vmatprep.subr.bf16.mxu1 %v477_v0 }
   0xf   :  { %428 = vmatpush3.bf16.msra.mxu0 %v457_v13 }
  0x10   :  { %410 = vmatpush3.bf16.msra.mxu1 %v450_v6  ;;  %429 = vmatprep.subr.bf16.mxu0 %v477_v0 }
  0x11   :  { %411 = vmatprep.subr.bf16.mxu1 %v477_v0 }
  0x13   :  { %430 = vmatpush3.bf16.msra.mxu0 %v458_v14 }
  0x14   :  { %412 = vmatpush3.bf16.msra.mxu1 %v451_v7  ;;  %431 = vmatprep.subr.bf16.mxu0 %v477_v0 }
  0x15   :  { %413 = vmatprep.subr.bf16.mxu1 %v477_v0 }
  0x17   :  { %432 = vmatpush3.bf16.msra.mxu0 %v459_v25 }
  0x18   :  { %414 = vmatpush3.bf16.msra.mxu1 %v452_v8  ;;  %433 = vmatprep.subr.bf16.mxu0 %v477_v0 }
  0x19   :  { %415 = vmatprep.subr.bf16.mxu1 %v477_v0 }
  0x1b   :  { %434 = vmatpush3.bf16.msra.mxu0 %v460_v26 }
  0x1c   :  { %416 = vmatpush3.bf16.msra.mxu1 %v453_v9  ;;  %435 = vmatprep.subr.bf16.mxu0 %v477_v0 }
  0x1d   :  { %417 = vmatprep.subr.bf16.mxu1 %v477_v0 }
  0x1f   :  { %436 = vmatpush3.bf16.msra.mxu0 %v461_v27 }
  0x20   :  { %418 = vmatpush3.bf16.msra.mxu1 %v454_v10  ;;  %437 = vmatprep.subr.bf16.mxu0 %v477_v0 }
  0x23   :  { %438 = vmatpush3.bf16.msra.mxu0 %v462_v28 }
  0xd9   :  { %v93_v16 = vpop.f32.mrb[0].mxu0 }
  0xda   :  { %v94_v17 = vadd.f32 %v355_v15, %v93_v16  ;;  %v401_v18 = vpop.f32.mrb[1].mxu0 }
  0xdb   :  { %v96_v19 = vpop.f32.mrb[2].mxu0 }
  0xdc   :  { %v97_v20 = vadd.f32 %v355_v15, %v96_v19  ;;  %v402_v21 = vpop.f32.mrb[3].mxu0  ;;  %463 = vtanh.f32 %v94_v17 }
  0xde   :  { %465 = vtanh.f32 %v97_v20 }
  0xe6   :  { %v464_v22 = vpop.eup %463 }
  0xe8   :  { %v466_v23 = vpop.eup %465 }
  0xe9   :  { %v102_v24 = vpack.c.bf16 %v466_v23, %v464_v22 }
  0xeb   :  { %420 = vmatmul.mubr.bf16.vlgmr.msra.gmra.mrb[0].mxu1 %v102_v24 }
 0x1be   :  { %v208_v30 = vpop.f32.mrb[0].mxu1 }
 0x1bf   :  { %v209_v31 = vadd.f32 %v359_v29, %v208_v30  ;;  %v421_v32 = vpop.f32.mrb[1].mxu1 }
 0x1c0   :  { %v211_v33 = vpop.f32.mrb[2].mxu1 }
 0x1c1   :  { %v212_v34 = vadd.f32 %v359_v29, %v211_v33  ;;  %v422_v35 = vpop.f32.mrb[3].mxu1  ;;  %467 = vtanh.f32 %v209_v31 }
 0x1c3   :  { %469 = vtanh.f32 %v212_v34 }
 0x1c4   :  { %471 = vpow2.f32 %v334_v41 }
 0x1cb   :  { %v468_v36 = vpop.eup %467 }
 0x1cd   :  { %v470_v37 = vpop.eup %469 }
 0x1ce   :  { %v217_v38 = vpack.c.bf16 %v470_v37, %v468_v36  ;;  %v472_v50 = vpop.eup %471 }
 0x1cf   :  { %v342_v53 = vrot.slane %v472_v50, %v341_v48 }
 0x1d0   :  { %440 = vmatmul.mubr.bf16.vlgmr.msra.gmra.mrb[4].mxu0 %v217_v38 }
 0x1d1   :  { %v344_v56 = vmul.f32 %v342_v53, %v336_v54  ;;  %v345_v57 = vmul.f32 %v342_v53, %v337_v55 }
 0x2a3   :  { %v323_v45 = vpop.f32.mrb[4].mxu0 }
 0x2a4   :  { %v324_v46 = vadd.f32 %v368_v43, %v323_v45  ;;  %v441_v47 = vpop.f32.mrb[5].mxu0 }
 0x2a5   :  { %v326_v49 = vpop.f32.mrb[6].mxu0 }
 0x2a6   :  { %473 = vtanh.f32 %v324_v46  ;;  %v327_v51 = vadd.f32 %v368_v43, %v326_v49  ;;  %v442_v52 = vpop.f32.mrb[7].mxu0 }
 0x2a8   :  { %475 = vtanh.f32 %v327_v51 }
 0x2b0   :  { %v474_v58 = vpop.eup %473 }
 0x2b1   :  { %v346_v59 = vadd.f32 %v474_v58, %v344_v56 }
 0x2b2   :  { %v476_v60 = vpop.eup %475 }
 0x2b3   :  { %349 = vst.msk [vmem:[%s636_s9] sm:$0xff] %vm348_vm2, %v346_v59  ;;  %v347_v61 = vadd.f32 %v476_v60, %v345_v57 }
 0x2b5   :  { %350 = vst.msk [vmem:[%s636_s9 + $0x8] sm:$0xff] %vm348_vm2, %v347_v61 }

</bundles_post_ra>
